<compile_context>
chip_gen: v5e
topology: v5e:2x2
jax: 0.10.0
libtpu: 0.0.40
codegen_flags: <defaults>
</compile_context>

<pallas_src>
import functools

import jax
import jax.numpy as jnp
import numpy as np
from jax.experimental import pallas as pl
from jax.experimental.pallas import tpu as pltpu


def _round_up(x, m):
    return -(-x // m) * m


def _sublane(itemsize):
    # Sublane tile of the second-to-last dim: 8 for 4-byte, 16 for 2-byte,
    # 32 for 1-byte dtypes.
    return {4: 8, 2: 16, 1: 32}.get(itemsize, 8)


def _tpu_generation_params():
    """(vmem_budget_bytes, vmem_limit_bytes, num_tensorcores) for this chip."""
    vmem_phys = None
    try:
        vmem_phys = int(getattr(pltpu.get_tpu_info(), "vmem_capacity_bytes"))
    except Exception:
        vmem_phys = None
    kind = ""
    try:
        kind = jax.devices()[0].device_kind.lower()
    except Exception:
        pass

    if (vmem_phys is not None and vmem_phys <= (64 << 20)) or "v7" in kind:
        # v7x-class: 64 MiB VMEM per TC, 2 TensorCores per chip.
        return 22 << 20, 48 << 20, 2
    if "v5 lite" in kind or "v5lite" in kind or "v5e" in kind:
        # v5e: 128 MiB VMEM (16 MiB scoped default), 1 TC, slowest MXU.
        return 11 << 20, 32 << 20, 1
    if "v4" in kind or "v5p" in kind:
        # Megacore parts: 2 TCs, plenty of VMEM.
        return 22 << 20, 48 << 20, 2
    # v6e and other 128-MiB single-TC parts.
    return 22 << 20, 48 << 20, 1


def _block_vmem_bytes(nb, C, HW, Cout, HoWo, itemsize):
    """Tile-padded VMEM footprint of one grid step: streamed blocks are
    double-buffered (x2) and the in-kernel f32 temporaries are included."""
    sub = _sublane(itemsize)
    in_blk = nb * _round_up(C, sub) * _round_up(HW, 128) * itemsize
    out_blk = nb * _round_up(Cout, sub) * _round_up(HoWo, 128) * itemsize
    sw_blk = _round_up(HW, sub) * _round_up(HoWo, 128) * itemsize
    # f32 dot result `a` + its cast copy before the store (counted at f32).
    temps = 2 * nb * _round_up(C, 8) * _round_up(HoWo, 128) * 4
    return 2 * (in_blk + out_blk) + 2 * sw_blk + temps


def _pick_batch_block(n, block_bytes, budget, num_cores):
    """Largest batch divisor whose grid step fits the VMEM budget.  On 2-TC
    chips prefer an even (>=2) number of grid steps so both TensorCores stay
    busy; on 1-TC chips a single grid step is allowed (no useless pipeline
    boundary)."""
    fits = [d for d in range(1, n + 1) if n % d == 0 and block_bytes(d) <= budget]
    if not fits:
        return 1
    if num_cores > 1 and n >= 2:
        even = [d for d in fits if (n // d) % 2 == 0]
        if even:
            return max(even)
        multi = [d for d in fits if (n // d) >= 2]
        if multi:
            return max(multi)
    return max(fits)


def _lambda_shortcut_kernel(x_ref, sw_ref, o_ref, *, pad_lo):
    """x_ref: (Nb, C, H*W); sw_ref: (H*W, Ho*Wo); o_ref: (Nb, C+2*pad_lo, Ho*Wo)."""
    Nb, C, HW = x_ref.shape
    HoWo = o_ref.shape[2]

    # Single-pass stores: zero only the pad channels; the data channels are
    # written exactly once below.
    if pad_lo > 0:
        zpad = jnp.zeros((Nb, pad_lo, HoWo), o_ref.dtype)
        o_ref[:, :pad_lo, :] = zpad
        o_ref[:, pad_lo + C:, :] = zpad

    # Dense 0/1 selection matmul over the flattened spatial dim.  Each output
    # element is a single-term x * 1 sum; Precision.HIGHEST keeps the f32 MXU
    # path bit-exact on all generations.  Output is already lane-dense.
    a = jnp.dot(x_ref[...].reshape(Nb * C, HW), sw_ref[...],
                precision=jax.lax.Precision.HIGHEST,
                preferred_element_type=jnp.float32)          # (Nb*C, Ho*Wo)
    o_ref[:, pad_lo:pad_lo + C, :] = a.reshape(Nb, C, HoWo).astype(o_ref.dtype)


def lambda_layer(x, planes):
    """Pallas implementation of LambdaLayer with the option-A shortcut lambda."""
    N, C, H, W = x.shape
    Ho, Wo = -(-H // 2), -(-W // 2)          # ceil: matches x[:, :, ::2, ::2]
    pad = planes // 4
    Cout = C + 2 * pad
    HW, HoWo = H * W, Ho * Wo

    # Lane-dense layout: flatten the spatial dims (free contiguous reshapes).
    x_flat = x.reshape(N, C, HW)

    # 0/1 selection matrix: column (ho*Wo + wo) has a single 1 at row
    # (2*ho*W + 2*wo).  0/1 is exactly representable in any float dtype.
    src = (2 * jnp.arange(Ho)[:, None] * W
           + 2 * jnp.arange(Wo)[None, :]).reshape(HoWo)       # (Ho*Wo,)
    sw = (jnp.arange(HW)[:, None] == src[None, :]).astype(x.dtype)   # (HW, HoWo)

    budget, vmem_limit, num_cores = _tpu_generation_params()
    itemsize = jnp.dtype(x.dtype).itemsize
    nb = _pick_batch_block(
        N, lambda d: _block_vmem_bytes(d, C, HW, Cout, HoWo, itemsize),
        budget, num_cores)

    kernel = functools.partial(_lambda_shortcut_kernel, pad_lo=pad)

    out_flat = pl.pallas_call(
        kernel,
        out_shape=jax.ShapeDtypeStruct((N, Cout, HoWo), x.dtype),
        grid=(N // nb,),
        in_specs=[
            pl.BlockSpec((nb, C, HW), lambda b: (b, 0, 0)),
            pl.BlockSpec((HW, HoWo), lambda b: (0, 0)),   # resident; not re-DMA'd
        ],
        out_specs=pl.BlockSpec((nb, Cout, HoWo), lambda b: (b, 0, 0)),
        compiler_params=pltpu.CompilerParams(
            dimension_semantics=("parallel",),
            vmem_limit_bytes=vmem_limit),
    )(x_flat, sw)

    return out_flat.reshape(N, Cout, Ho, Wo)


if __name__ == "__main__":
    key = jax.random.PRNGKey(0)
    N, C, H, W = 2, 4, 16, 16
    planes = 8  # -> pad = 2 channels each side, C_out = 8
    x = jax.random.normal(key, (N, C, H, W), dtype=jnp.float32)

    out = lambda_layer(x, planes)
    out = jax.block_until_ready(out)

    # Pure-JAX reference of the lambda:
    pad = planes // 4
    ref = jnp.pad(x[:, :, ::2, ::2], ((0, 0), (pad, pad), (0, 0), (0, 0)))
    assert out.shape == ref.shape
    np.testing.assert_allclose(np.asarray(out), np.asarray(ref), rtol=0, atol=0)

    print("KERNEL_OK")
</pallas_src>

<mosaic_0001>
module attributes {stable_mosaic.version = 11 : i64} {
  func.func @_lambda_shortcut_kernel(%arg0: i32, %arg1: memref<2x4x256xf32, #tpu.memory_space<vmem>>, %arg2: memref<256x64xf32, #tpu.memory_space<vmem>>, %arg3: memref<2x8x64xf32, #tpu.memory_space<vmem>>) attributes {dimension_semantics = [#tpu.dimension_semantics<parallel>], iteration_bounds = array<i64: 1>, scalar_prefetch = 0 : i64, scratch_operands = 0 : i64, tpu.core_type = #tpu.core_type<tc>, window_params = [{transform_indices = @transform_0, window_bounds = array<i64: 2, 4, 256>}, {pipeline_mode = #tpu.pipeline_mode<synchronous>, transform_indices = @transform_1, window_bounds = array<i64: 256, 64>}, {transform_indices = @transform_2, window_bounds = array<i64: 2, 8, 64>}]} {
    %cst = arith.constant 0.000000e+00 : f32
    %0 = vector.broadcast %cst : f32 to vector<2x2x64xf32>
    %c0 = arith.constant 0 : index
    %c0_0 = arith.constant 0 : index
    %c0_1 = arith.constant 0 : index
    %1 = vector.load %arg3[%c0, %c0_0, %c0_1] : memref<2x8x64xf32, #tpu.memory_space<vmem>>, vector<2x2x64xf32>
    tpu.vector_store %arg3[%c0, %c0_0, %c0_1], %0 {strides = array<i32>} : memref<2x8x64xf32, #tpu.memory_space<vmem>>, vector<2x2x64xf32>,
    %c0_2 = arith.constant 0 : index
    %c6 = arith.constant 6 : index
    %c0_3 = arith.constant 0 : index
    %2 = vector.load %arg3[%c0_2, %c6, %c0_3] : memref<2x8x64xf32, #tpu.memory_space<vmem>>, vector<2x2x64xf32>
    tpu.vector_store %arg3[%c0_2, %c6, %c0_3], %0 {strides = array<i32>} : memref<2x8x64xf32, #tpu.memory_space<vmem>>, vector<2x2x64xf32>,
    %c0_4 = arith.constant 0 : index
    %c0_5 = arith.constant 0 : index
    %c0_6 = arith.constant 0 : index
    %3 = vector.load %arg1[%c0_4, %c0_5, %c0_6] : memref<2x4x256xf32, #tpu.memory_space<vmem>>, vector<2x4x256xf32>
    %4 = vector.shape_cast %3 : vector<2x4x256xf32> to vector<8x256xf32>
    %c0_7 = arith.constant 0 : index
    %c0_8 = arith.constant 0 : index
    %5 = vector.load %arg2[%c0_7, %c0_8] : memref<256x64xf32, #tpu.memory_space<vmem>>, vector<256x64xf32>
    %cst_9 = arith.constant dense<0.000000e+00> : vector<8x64xf32>
    %6 = tpu.matmul %4, %5, %cst_9 {dimension_numbers = #tpu.dot_dimension_numbers<[1], [0], [0], [1], [0, 0, 1, 1], [], []>, precision = #tpu.contract_precision<fp32>} : vector<8x256xf32>, vector<256x64xf32>, vector<8x64xf32> -> vector<8x64xf32>
    %7 = vector.shape_cast %6 : vector<8x64xf32> to vector<2x4x64xf32>
    %c0_10 = arith.constant 0 : index
    %c2 = arith.constant 2 : index
    %c0_11 = arith.constant 0 : index
    %8 = vector.load %arg3[%c0_10, %c2, %c0_11] : memref<2x8x64xf32, #tpu.memory_space<vmem>>, vector<2x4x64xf32>
    tpu.vector_store %arg3[%c0_10, %c2, %c0_11], %7 {strides = array<i32>} : memref<2x8x64xf32, #tpu.memory_space<vmem>>, vector<2x4x64xf32>,
    return
  }
  func.func @transform_0(%arg0: i32) -> (i32, i32, i32) {
    %c0_i32 = arith.constant 0 : i32
    %c0_i32_0 = arith.constant 0 : i32
    %c0_i32_1 = arith.constant 0 : i32
    return %arg0, %c0_i32, %c0_i32_0 : i32, i32, i32
  }
  func.func @transform_1(%arg0: i32) -> (i32, i32) {
    %c0_i32 = arith.constant 0 : i32
    %c0_i32_0 = arith.constant 0 : i32
    %c0_i32_1 = arith.constant 0 : i32
    return %c0_i32, %c0_i32_0 : i32, i32
  }
  func.func @transform_2(%arg0: i32) -> (i32, i32, i32) {
    %c0_i32 = arith.constant 0 : i32
    %c0_i32_0 = arith.constant 0 : i32
    %c0_i32_1 = arith.constant 0 : i32
    return %arg0, %c0_i32, %c0_i32_0 : i32, i32, i32
  }
}

</mosaic_0001>

<bundles_post_ra>
// kernel: tpu_custom_call.1
= control target key start
LH: loop header
LB: loop body
LE: loop exit
PB: predicated region body
PF: predicated region fallthrough
CT: control target
= control target key end

     0   :  { %s1426_s0 = inlined_call_operand.vmem [shape: f32[2,4,256], index: 0, kind: input, shape index: {}]   ;;  %s1427_s1 = inlined_call_operand.vmem [shape: f32[256,64], index: 1, kind: input, shape index: {}]   ;;  %s1428_s2 = inlined_call_operand.hbm [shape: f32[2,8,64], index: 2, kind: output, shape index: {}]  }
   0x1   :  { %v34_v0 = vld [vmem:[%s1427_s1 + $0x78] sm:$0xff]  ;;  %v33_v1 = vld [vmem:[%s1427_s1 + $0x70] sm:$0xff]  ;;  %v32_v2 = vld [vmem:[%s1427_s1 + $0x68] sm:$0xff] }
   0x2   :  { %v824_v3 = vand.u32 4294901760, %v34_v0  ;;  %v826_v4 = vand.u32 4294901760, %v33_v1  ;;  %v828_v5 = vand.u32 4294901760, %v32_v2  ;;  %v31_v6 = vld [vmem:[%s1427_s1 + $0x60] sm:$0xff]  ;;  %v30_v7 = vld [vmem:[%s1427_s1 + $0x58] sm:$0xff]  ;;  %v29_v8 = vld [vmem:[%s1427_s1 + $0x50] sm:$0xff] }
   0x3   :  { %v839_v9 = vand.u32 4294901760, %v31_v6  ;;  %v841_v10 = vand.u32 4294901760, %v30_v7  ;;  %v843_v11 = vand.u32 4294901760, %v29_v8  ;;  %v28_v12 = vld [vmem:[%s1427_s1 + $0x48] sm:$0xff]  ;;  %v27_v13 = vld [vmem:[%s1427_s1 + $0x40] sm:$0xff]  ;;  %v26_v18 = vld [vmem:[%s1427_s1 + $0x38] sm:$0xff] }
   0x4   :  { %61 = vmatpush.msra.mxu0 %v824_v3  ;;  %v853_v14 = vsub.f32 %v34_v0, %v824_v3  ;;  %v856_v15 = vsub.f32 %v33_v1, %v826_v4  ;;  %257 = vmatpush.msra.mxu3 %v824_v3  ;;  %v860_v16 = vsub.f32 %v32_v2, %v828_v5  ;;  %v862_v17 = vand.u32 4294901760, %v28_v12  ;;  %v25_v26 = vld [vmem:[%s1427_s1 + $0x30] sm:$0xff]  ;;  %v24_v34 = vld [vmem:[%s1427_s1 + $0x28] sm:$0xff] }
   0x5   :  { %v868_v19 = vsub.f32 %v31_v6, %v839_v9  ;;  %v871_v20 = vsub.f32 %v30_v7, %v841_v10  ;;  %v874_v21 = vsub.f32 %v29_v8, %v843_v11  ;;  %v881_v25 = vand.u32 4294901760, %v27_v13 }
   0x6   :  { %63 = vmatpush.msra.mxu0 %v826_v4  ;;  %204 = vmatpush.msra.mxu2 %v853_v14  ;;  %v103_v22 = vand.u32 4294901760, %v853_v14  ;;  %v1444_v23 = vand.u32 4294901760, %v856_v15  ;;  %v1442_v24 = vand.u32 4294901760, %v860_v16  ;;  %v888_v28 = vand.u32 4294901760, %v26_v18 }
   0x7   :  { %259 = vmatpush.msra.mxu3 %v826_v4  ;;  %v1440_v27 = vand.u32 4294901760, %v868_v19  ;;  %v891_v29 = vsub.f32 %v28_v12, %v862_v17  ;;  %v1438_v33 = vand.u32 4294901760, %v871_v20 }
   0x8   :  { %65 = vmatpush.msra.mxu0 %v828_v5  ;;  %207 = vmatpush.msra.mxu2 %v856_v15  ;;  %v104_v30 = vsub.f32 %v853_v14, %v103_v22  ;;  %v110_v31 = vsub.f32 %v856_v15, %v1444_v23  ;;  %v116_v32 = vsub.f32 %v860_v16, %v1442_v24 }
   0x9   :  { %7 = vsyncpa [#allocation3], 0  ;;  %261 = vmatpush.msra.mxu3 %v828_v5  ;;  %v909_v35 = vand.u32 4294901760, %v25_v26  ;;  %v1437_v36 = vand.u32 4294901760, %v874_v21  ;;  %v122_v39 = vsub.f32 %v868_v19, %v1440_v27  ;;  %v918_v40 = vsub.f32 %v27_v13, %v881_v25  ;;  %v23_v42 = vld [vmem:[%s1427_s1 + $0x20] sm:$0xff]  ;;  %v22_v48 = vld [vmem:[%s1427_s1 + $0x18] sm:$0xff] }
   0xa   :  { %67 = vmatpush.msra.mxu0 %v839_v9  ;;  %v105_v37 = vand.u32 4294901760, %v104_v30  ;;  %210 = vmatpush.msra.mxu2 %v860_v16  ;;  %v111_v38 = vand.u32 4294901760, %v110_v31  ;;  %v921_v41 = vand.u32 4294901760, %v24_v34  ;;  %v117_v43 = vand.u32 4294901760, %v116_v32  ;;  %v21_v54 = vld [vmem:[%s1427_s1 + $0x10] sm:$0xff]  ;;  %v17_v55 = vld [vmem:[%s1426_s0] sm:$0xff] }
   0xb   :  { %263 = vmatpush.msra.mxu3 %v839_v9  ;;  %v128_v44 = vsub.f32 %v871_v20, %v1438_v33  ;;  %v1435_v45 = vand.u32 4294901760, %v891_v29  ;;  %v932_v46 = vsub.f32 %v26_v18, %v888_v28  ;;  %v134_v47 = vsub.f32 %v874_v21, %v1437_v36  ;;  %v18_v56 = vld [vmem:[%s1426_s0 + $0x8] sm:$0xff]  ;;  %v50_v61 = vld [vmem:[%s1427_s1 + $0xf8] sm:$0xff]  ;;  %53 = vst [vmem:[#allocation1] ss:$2 sm:$0xff] %v17_v55  ;;  %v19_v7 = vld [vmem:[%s1427_s1] sm:$0xff] }
   0xc   :  { %69 = vmatpush.msra.mxu0 %v841_v10  ;;  %106 = vmatpush.msra.mxu1 %v105_v37  ;;  %v123_v49 = vand.u32 4294901760, %v122_v39  ;;  %v943_v50 = vand.u32 4294901760, %v23_v42  ;;  %v1434_v51 = vand.u32 4294901760, %v918_v40  ;;  %v947_v52 = vsub.f32 %v25_v26, %v909_v35  ;;  %v20_v63 = vld [vmem:[%s1427_s1 + $0x8] sm:$0xff]  ;;  %55 = vst [vmem:[#allocation1 + $0x1] ss:$2 sm:$0xff] %v18_v56 }
   0xd   :  { %213 = vmatpush.msra.mxu2 %v868_v19  ;;  %265 = vmatpush.msra.mxu3 %v841_v10  ;;  %v952_v53 = vsub.f32 %v24_v34, %v921_v41  ;;  %v129_v57 = vand.u32 4294901760, %v128_v44  ;;  %v140_v58 = vsub.f32 %v891_v29, %v1435_v45  ;;  %v967_v59 = vand.u32 4294901760, %v22_v48  ;;  %v49_v8 = vld [vmem:[%s1427_s1 + $0xf0] sm:$0xff]  ;;  %v48_v37 = vld [vmem:[%s1427_s1 + $0xe8] sm:$0xff]  ;;  %v43_v45 = vld [vmem:[%s1427_s1 + $0xc0] sm:$0xff]  ;;  %s754_s22 = sshll.u32 %s1428_s2, 4  ;;  %s755_s22 = int_to_ptr.hbm [resolvable:$true] %s754_s22 }
   0xe   :  { %71 = vmatpush.msra.mxu0 %v843_v11  ;;  %112 = vmatpush.msra.mxu1 %v111_v38  ;;  %v1433_v60 = vand.u32 4294901760, %v932_v46  ;;  %v135_v62 = vand.u32 4294901760, %v134_v47  ;;  %v146_v0 = vsub.f32 %v918_v40, %v1434_v51  ;;  %v982_v1 = vand.u32 4294901760, %v21_v54  ;;  %s798_s23 = smov 128   ;;  %s799_s24 = smov 8  }
   0xf   :  { %216 = vmatpush.msra.mxu2 %v871_v20  ;;  %267 = vmatpush.msra.mxu3 %v843_v11  ;;  %v1431_v2 = vand.u32 4294901760, %v947_v52  ;;  %v986_v6 = vsub.f32 %v23_v42, %v943_v50  ;;  %v1430_v12 = vand.u32 4294901760, %v952_v53  ;;  %v997_v13 = vand.u32 4294901760, %v50_v61 }
  0x10   :  { %73 = vmatpush.msra.mxu0 %v862_v17  ;;  %118 = vmatpush.msra.mxu1 %v117_v43  ;;  %v141_v18 = vand.u32 4294901760, %v140_v58  ;;  %v152_v26 = vsub.f32 %v932_v46, %v1433_v60  ;;  %v1003_v30 = vand.u32 4294901760, %v20_v63  ;;  %v1006_v31 = vsub.f32 %v22_v48, %v967_v59  ;;  %v47_v48 = vld [vmem:[%s1427_s1 + $0xe0] sm:$0xff] }
  0x11   :  { %219 = vmatpush.msra.mxu2 %v874_v21  ;;  %269 = vmatpush.msra.mxu3 %v862_v17  ;;  %v1010_v32 = vand.u32 4294901760, %v19_v7  ;;  %v1012_v34 = vand.u32 4294901760, %v49_v8  ;;  %v147_v38 = vand.u32 4294901760, %v146_v0  ;;  %v158_v39 = vsub.f32 %v947_v52, %v1431_v2 }
  0x12   :  { %75 = vmatpush.msra.mxu0 %v881_v25  ;;  %124 = vmatpush.msra.mxu1 %v123_v49  ;;  %v1429_v42 = vand.u32 4294901760, %v986_v6  ;;  %v1023_v43 = vsub.f32 %v21_v54, %v982_v1  ;;  %v164_v44 = vsub.f32 %v952_v53, %v1430_v12  ;;  %v1031_v47 = vsub.f32 %v50_v61, %v997_v13  ;;  %v46_v61 = vld [vmem:[%s1427_s1 + $0xd8] sm:$0xff]  ;;  %v44_v12 = vld [vmem:[%s1427_s1 + $0xc8] sm:$0xff] }
  0x13   :  { %222 = vmatpush.msra.mxu2 %v891_v29  ;;  %271 = vmatpush.msra.mxu3 %v881_v25  ;;  %v153_v49 = vand.u32 4294901760, %v152_v26  ;;  %v1432_v54 = vand.u32 4294901760, %v1006_v31  ;;  %v1039_v55 = vsub.f32 %v20_v63, %v1003_v30  ;;  %v1041_v56 = vand.u32 4294901760, %v48_v37  ;;  %v45_v26 = vld [vmem:[%s1427_s1 + $0xd0] sm:$0xff] }
  0x14   :  { %77 = vmatpush.msra.mxu0 %v888_v28  ;;  %130 = vmatpush.msra.mxu1 %v129_v57  ;;  %v1046_v57 = vsub.f32 %v19_v7, %v1010_v32  ;;  %v1049_v58 = vsub.f32 %v49_v8, %v1012_v34  ;;  %v170_v63 = vsub.f32 %v986_v6, %v1429_v42  ;;  %v1436_v0 = vand.u32 4294901760, %v1023_v43 }
  0x15   :  { %225 = vmatpush.msra.mxu2 %v918_v40  ;;  %273 = vmatpush.msra.mxu3 %v888_v28  ;;  %1453 = vst [vmem:[#allocation5_spill] sm:$0xff] %v1041_v56  ;;  %v165_v7 = vand.u32 4294901760, %v164_v44  ;;  %v1439_v8 = vand.u32 4294901760, %v1031_v47  ;;  %v1073_v42 = vsub.f32 %v48_v37, %v1041_v56  ;;  %v1075_v44 = vand.u32 4294901760, %v46_v61 }
  0x16   :  { %79 = vmatpush.msra.mxu0 %v909_v35  ;;  %136 = vmatpush.msra.mxu1 %v135_v62  ;;  %v159_v62 = vand.u32 4294901760, %v158_v39  ;;  %v1441_v39 = vand.u32 4294901760, %v1039_v55  ;;  %v1443_v2 = vand.u32 4294901760, %v1049_v58  ;;  %v182_v37 = vsub.f32 %v1023_v43, %v1436_v0 }
  0x17   :  { %228 = vmatpush.msra.mxu2 %v932_v46  ;;  %275 = vmatpush.msra.mxu3 %v909_v35  ;;  %v1091_v51 = vand.u32 4294901760, %v45_v26  ;;  %v1446_v36 = vand.u32 4294901760, %v1073_v42  ;;  %v1109_v33 = vsub.f32 %v46_v61, %v1075_v44  ;;  %v1116_v27 = vand.u32 4294901760, %v43_v45 }
  0x18   :  { %81 = vmatpush.msra.mxu0 %v921_v41  ;;  %142 = vmatpush.msra.mxu1 %v141_v18  ;;  %v1059_v18 = vand.u32 4294901760, %v47_v48  ;;  %v188_v0 = vsub.f32 %v1039_v55, %v1441_v39  ;;  %vm12_vm0 = vcmask 517120   ;;  %vm745_vm1 = vcmask 519168  }
  0x19   :  { %231 = vmatpush.msra.mxu2 %v947_v52  ;;  %277 = vmatpush.msra.mxu3 %v921_v41  ;;  %v1127_v24 = vsub.f32 %v45_v26, %v1091_v51  ;;  %v457_v26 = vsub.f32 %v1073_v42, %v1446_v36  ;;  %v1448_v14 = vand.u32 4294901760, %v1109_v33 }
  0x1a   :  { %83 = vmatpush.msra.mxu0 %v943_v50  ;;  %148 = vmatpush.msra.mxu1 %v147_v38  ;;  %v176_v38 = vsub.f32 %v1006_v31, %v1432_v54  ;;  %v171_v54 = vand.u32 4294901760, %v170_v63  ;;  %v1089_v60 = vsub.f32 %v47_v48, %v1059_v18  ;;  %v1101_v63 = vand.u32 4294901760, %v44_v12 }
  0x1b   :  { %234 = vmatpush.msra.mxu2 %v952_v53  ;;  %279 = vmatpush.msra.mxu3 %v943_v50 }
  0x1c   :  { %85 = vmatpush.msra.mxu0 %v967_v59  ;;  %154 = vmatpush.msra.mxu1 %v153_v49  ;;  %v1445_v49 = vand.u32 4294901760, %v1046_v57  ;;  %v177_v48 = vand.u32 4294901760, %v176_v38  ;;  %v183_v38 = vand.u32 4294901760, %v182_v37  ;;  %v1447_v39 = vand.u32 4294901760, %v1089_v60 }
  0x1d   :  { %237 = vmatpush.msra.mxu2 %v986_v6  ;;  %281 = vmatpush.msra.mxu3 %v967_v59  ;;  %v1133_v23 = vsub.f32 %v44_v12, %v1101_v63  ;;  %v189_v37 = vand.u32 4294901760, %v188_v0  ;;  %v40_v0 = vld [vmem:[%s1427_s1 + $0xa8] sm:$0xff] }
  0x1e   :  { %87 = vmatpush.msra.mxu0 %v982_v1  ;;  %160 = vmatpush.msra.mxu1 %v159_v62  ;;  %v445_v62 = vsub.f32 %v1031_v47, %v1439_v8  ;;  %v451_v8 = vsub.f32 %v1049_v58, %v1443_v2  ;;  %v194_v61 = vsub.f32 %v1046_v57, %v1445_v49 }
  0x1f   :  { %240 = vmatpush.msra.mxu2 %v1006_v31  ;;  %283 = vmatpush.msra.mxu3 %v982_v1  ;;  %v1149_v49 = vsub.f32 %v43_v45, %v1116_v27  ;;  %v463_v36 = vsub.f32 %v1089_v60, %v1447_v39  ;;  %v469_v39 = vsub.f32 %v1109_v33, %v1448_v14  ;;  %v1457_v14 = vand.u32 4294901760, %v1127_v24 }
  0x20   :  { %89 = vmatpush.msra.mxu0 %v1003_v30  ;;  %166 = vmatpush.msra.mxu1 %v165_v7  ;;  %v42_v7 = vld [vmem:[%s1427_s1 + $0xb8] sm:$0xff]  ;;  %v446_v2 = vand.u32 4294901760, %v445_v62  ;;  %v1454_v62 = vand.u32 4294901760, %v856_v15  ;;  %v452_v12 = vand.u32 4294901760, %v451_v8  ;;  %v1455_v8 = vand.u32 4294901760, %v860_v16 }
  0x21   :  { %243 = vmatpush.msra.mxu2 %v1023_v43  ;;  %285 = vmatpush.msra.mxu3 %v1003_v30  ;;  %v1174_v16 = vand.u32 4294901760, %v40_v0 }
  0x22   :  { %91 = vmatpush.msra.mxu0 %v1010_v32  ;;  %172 = vmatpush.msra.mxu1 %v171_v54  ;;  %v41_v54 = vld [vmem:[%s1427_s1 + $0xb0] sm:$0xff] }
  0x23   :  { %246 = vmatpush.msra.mxu2 %v1039_v55  ;;  %287 = vmatpush.msra.mxu3 %v1010_v32 }
  0x24   :  { %298 = vmatpush.msrb.mxu0 %v103_v22  ;;  %178 = vmatpush.msra.mxu1 %v177_v48  ;;  %v1143_v22 = vand.u32 4294901760, %v42_v7  ;;  %v195_v48 = vand.u32 4294901760, %v194_v61  ;;  %v458_v61 = vand.u32 4294901760, %v457_v26  ;;  %v464_v26 = vand.u32 4294901760, %v463_v36 }
  0x25   :  { %249 = vmatpush.msra.mxu2 %v1046_v57  ;;  %447 = vmatpush.msrb.mxu3 %v446_v2  ;;  %v1456_v2 = vand.u32 4294901760, %v868_v19  ;;  %v470_v36 = vand.u32 4294901760, %v469_v39  ;;  %v37_v39 = vld [vmem:[%s1427_s1 + $0x90] sm:$0xff] }
  0x26   :  { %302 = vmatpush.msrb.mxu0 %v1454_v62  ;;  %184 = vmatpush.msra.mxu1 %v183_v38  ;;  %v1159_v62 = vand.u32 4294901760, %v41_v54  ;;  %v39_v38 = vld [vmem:[%s1427_s1 + $0xa0] sm:$0xff]  ;;  %v1172_v15 = vsub.f32 %v42_v7, %v1143_v22  ;;  %v475_v7 = vsub.f32 %v1127_v24, %v1457_v14 }
  0x27   :  { %402 = vmatpush.msrb.mxu2 %v997_v13  ;;  %453 = vmatpush.msrb.mxu3 %v452_v12  ;;  %v1189_v19 = vand.u32 4294901760, %v39_v38  ;;  %v1458_v12 = vand.u32 4294901760, %v871_v20  ;;  %v1460_v20 = vand.u32 4294901760, %v874_v21 }
  0x28   :  { %306 = vmatpush.msrb.mxu0 %v1455_v8  ;;  %190 = vmatpush.msra.mxu1 %v189_v37  ;;  %v38_v37 = vld [vmem:[%s1427_s1 + $0x98] sm:$0xff]  ;;  %v1187_v45 = vsub.f32 %v41_v54, %v1159_v62  ;;  %v56_v8 = vld.sshfl [vmem:[#allocation1] sm:$0xff pattern:$0x75316420]  ;;  %v1451_v14 = vand.u32 4294901760, %v1172_v15  ;;  %v1200_v54 = vsub.f32 %v40_v0, %v1174_v16  ;;  %v476_v0 = vand.u32 4294901760, %v475_v7 }
  0x29   :  { %404 = vmatpush.msrb.mxu2 %v1012_v34  ;;  %459 = vmatpush.msrb.mxu3 %v458_v61  ;;  %v1218_v21 = vand.u32 4294901760, %v56_v8  ;;  %v1231_v7 = vand.u32 4294901760, %v37_v39 }
  0x2a   :  { %310 = vmatpush.msrb.mxu0 %v1456_v2  ;;  %196 = vmatpush.msra.mxu1 %v195_v48  ;;  %v1459_v2 = vand.u32 4294901760, %v1133_v23  ;;  %v1452_v61 = vand.u32 4294901760, %v1187_v45 }
  0x2b   :  { %406 = vmatpush.msrb.mxu2 %v1041_v56  ;;  %v1202_v56 = vand.u32 4294901760, %v38_v37  ;;  %465 = vmatpush.msrb.mxu3 %v464_v26  ;;  %v504_v26 = vand.u32 4294901760, %v1200_v54 }
  0x2c   :  { %314 = vmatpush.msrb.mxu0 %v1458_v12  ;;  %365 = vmatpush.msrb.mxu1 %v824_v3  ;;  %v481_v48 = vsub.f32 %v1133_v23, %v1459_v2  ;;  %v1461_v3 = vand.u32 4294901760, %v1149_v49  ;;  %v1216_v2 = vsub.f32 %v39_v38, %v1189_v19  ;;  %v493_v38 = vsub.f32 %v1172_v15, %v1451_v14 }
  0x2d   :  { %408 = vmatpush.msrb.mxu2 %v1059_v18  ;;  %471 = vmatpush.msrb.mxu3 %v470_v36  ;;  %v499_v36 = vsub.f32 %v1187_v45, %v1452_v61  ;;  %v1245_v14 = vsub.f32 %v56_v8, %v1218_v21  ;;  %v505_v8 = vsub.f32 %v1200_v54, %v504_v26  ;;  %v1465_v61 = vand.u32 4294901760, %v947_v52 }
  0x2e   :  { %318 = vmatpush.msrb.mxu0 %v1460_v20  ;;  %367 = vmatpush.msrb.mxu1 %v826_v4  ;;  %v487_v12 = vsub.f32 %v1149_v49, %v1461_v3  ;;  %v1462_v4 = vand.u32 4294901760, %v891_v29  ;;  %v482_v20 = vand.u32 4294901760, %v481_v48  ;;  %v36_v3 = vld [vmem:[%s1427_s1 + $0x88] sm:$0xff]  ;;  %v1234_v29 = vsub.f32 %v38_v37, %v1202_v56 }
  0x2f   :  { %410 = vmatpush.msrb.mxu2 %v1075_v44  ;;  %477 = vmatpush.msrb.mxu3 %v476_v0  ;;  %v1247_v37 = vand.u32 4294901760, %v36_v3  ;;  %v1466_v52 = vand.u32 4294901760, %v952_v53 }
  0x30   :  { %322 = vmatpush.msrb.mxu0 %v1462_v4  ;;  %369 = vmatpush.msrb.mxu1 %v828_v5  ;;  %v1463_v5 = vand.u32 4294901760, %v918_v40  ;;  %v488_v48 = vand.u32 4294901760, %v487_v12  ;;  %v510_v4 = vand.u32 4294901760, %v1216_v2  ;;  %v35_v40 = vld [vmem:[%s1427_s1 + $0x80] sm:$0xff]  ;;  %v494_v12 = vand.u32 4294901760, %v493_v38  ;;  %s797_s1 = smov [#allocation2]  }
  0x31   :  { %412 = vmatpush.msrb.mxu2 %v1091_v51  ;;  %483 = vmatpush.msrb.mxu3 %v482_v20  ;;  %v516_v0 = vand.u32 4294901760, %v1234_v29  ;;  %v94_v38 = vand.u32 4294901760, %v1245_v14  ;;  %s752_s19 = sshll.u32 %s797_s1, 4  ;;  %s753_s19 = int_to_ptr.vmem [resolvable:$true] %s752_s19 }
  0x32   :  { %326 = vmatpush.msrb.mxu0 %v1463_v5  ;;  %371 = vmatpush.msrb.mxu1 %v839_v9  ;;  %v1464_v9 = vand.u32 4294901760, %v932_v46  ;;  %v1261_v5 = vsub.f32 %v37_v39, %v1231_v7  ;;  %v1266_v46 = vand.u32 4294901760, %v35_v40  ;;  %v511_v20 = vsub.f32 %v1216_v2, %v510_v4 }
  0x33   :  { %414 = vmatpush.msrb.mxu2 %v1101_v63  ;;  %489 = vmatpush.msrb.mxu3 %v488_v48  ;;  %v1274_v39 = vsub.f32 %v36_v3, %v1247_v37  ;;  %v517_v48 = vsub.f32 %v1234_v29, %v516_v0  ;;  %v95_v3 = vsub.f32 %v1245_v14, %v94_v38 }
  0x34   :  { %330 = vmatpush.msrb.mxu0 %v1464_v9  ;;  %373 = vmatpush.msrb.mxu1 %v841_v10  ;;  %v500_v10 = vand.u32 4294901760, %v499_v36  ;;  %v522_v36 = vand.u32 4294901760, %v1261_v5  ;;  %v1467_v9 = vand.u32 4294901760, %v986_v6  ;;  %v1288_v53 = vsub.f32 %v35_v40, %v1266_v46 }
  0x35   :  { %416 = vmatpush.msrb.mxu2 %v1116_v27  ;;  %495 = vmatpush.msrb.mxu3 %v494_v12  ;;  %v528_v12 = vand.u32 4294901760, %v1274_v39  ;;  %v1469_v40 = vand.u32 4294901760, %v1023_v43  ;;  %v1471_v43 = vand.u32 4294901760, %v1046_v57 }
  0x36   :  { %334 = vmatpush.msrb.mxu0 %v1465_v61  ;;  %375 = vmatpush.msrb.mxu1 %v843_v11  ;;  %v57_v11 = vld.sshfl [vmem:[#allocation1 + $0x8] sm:$0xff pattern:$0x75316420]  ;;  %v506_v61 = vand.u32 4294901760, %v505_v8  ;;  %v523_v6 = vsub.f32 %v1261_v5, %v522_v36 }
  0x37   :  { %418 = vmatpush.msrb.mxu2 %v1143_v22  ;;  %501 = vmatpush.msrb.mxu3 %v500_v10  ;;  %v1293_v8 = vand.u32 4294901760, %v57_v11  ;;  %v534_v10 = vand.u32 4294901760, %v1288_v53 }
  0x38   :  { %338 = vmatpush.msrb.mxu0 %v1466_v52  ;;  %377 = vmatpush.msrb.mxu1 %v862_v17  ;;  %v512_v17 = vand.u32 4294901760, %v511_v20  ;;  %v1468_v52 = vand.u32 4294901760, %v1006_v31  ;;  %v96_v31 = vand.u32 4294901760, %v95_v3 }
  0x39   :  { %420 = vmatpush.msrb.mxu2 %v1159_v62  ;;  %507 = vmatpush.msrb.mxu3 %v506_v61  ;;  %v1311_v20 = vsub.f32 %v57_v11, %v1293_v8  ;;  %v1470_v61 = vand.u32 4294901760, %v1039_v55 }
  0x3a   :  { %342 = vmatpush.msrb.mxu0 %v1467_v9  ;;  %379 = vmatpush.msrb.mxu1 %v881_v25  ;;  %v518_v25 = vand.u32 4294901760, %v517_v48  ;;  %v535_v48 = vsub.f32 %v1288_v53, %v534_v10 }
  0x3b   :  { %422 = vmatpush.msrb.mxu2 %v1174_v16  ;;  %513 = vmatpush.msrb.mxu3 %v512_v17  ;;  %v435_v11 = vand.u32 4294901760, %v1311_v20 }
  0x3c   :  { %346 = vmatpush.msrb.mxu0 %v1468_v52  ;;  %381 = vmatpush.msrb.mxu1 %v888_v28  ;;  %v529_v28 = vsub.f32 %v1274_v39, %v528_v12 }
  0x3d   :  { %424 = vmatpush.msrb.mxu2 %v1189_v19  ;;  %519 = vmatpush.msrb.mxu3 %v518_v25 }
  0x3e   :  { %350 = vmatpush.msrb.mxu0 %v1469_v40  ;;  %383 = vmatpush.msrb.mxu1 %v909_v35  ;;  %v524_v35 = vand.u32 4294901760, %v523_v6  ;;  %v530_v55 = vand.u32 4294901760, %v529_v28 }
  0x3f   :  { %426 = vmatpush.msrb.mxu2 %v1202_v56  ;;  %97 = vmatmul.f32.vlgmr.msra.gmra.mxu0 %v96_v31 }
  0x40   :  { %354 = vmatpush.msrb.mxu0 %v1470_v61  ;;  %385 = vmatpush.msrb.mxu1 %v921_v41  ;;  %v536_v41 = vand.u32 4294901760, %v535_v48 }
  0x41   :  { %428 = vmatpush.msrb.mxu2 %v1231_v7  ;;  %525 = vmatpush.msrb.mxu3 %v524_v35 }
  0x42   :  { %358 = vmatpush.msrb.mxu0 %v1471_v43  ;;  %387 = vmatpush.msrb.mxu1 %v943_v50  ;;  %v436_v50 = vsub.f32 %v1311_v20, %v435_v11 }
  0x43   :  { %430 = vmatpush.msrb.mxu2 %v1247_v37  ;;  %531 = vmatpush.msrb.mxu3 %v530_v55 }
  0x44   :  { %545 = vmatpush.msra.mxu0 %v1031_v47  ;;  %389 = vmatpush.msrb.mxu1 %v967_v59  ;;  %v1472_v59 = vand.u32 4294901760, %v1031_v47  ;;  %v437_v57 = vand.u32 4294901760, %v436_v50  ;;  %v1474_v47 = vand.u32 4294901760, %v1073_v42 }
  0x45   :  { %252 = vmatmul.f32.vlgmr.msra.gmra.mxu2 %v1245_v14  ;;  %291 = vmatmul.f32.vlgmr.msra.gmra.mxu3 %v94_v38 }
  0x46   :  { %548 = vmatpush.msra.mxu0 %v1049_v58  ;;  %391 = vmatpush.msrb.mxu1 %v982_v1  ;;  %v1473_v1 = vand.u32 4294901760, %v1049_v58  ;;  %v1476_v58 = vld [vmem:[#allocation5_spill] sm:$0xff] }
  0x47   :  { %432 = vmatpush.msrb.mxu2 %v1266_v46  ;;  %537 = vmatpush.msrb.mxu3 %v536_v41 }
  0x48   :  { %551 = vmatpush.msra.mxu0 %v1073_v42  ;;  %393 = vmatpush.msrb.mxu1 %v1003_v30  ;;  %v1475_v30 = vand.u32 4294901760, %v1089_v60 }
  0x49   :  { %639 = vmatpush.msra.mxu2 %v1472_v59  ;;  %198 = vmatmul.f32.vlgmr.msra.gmra.mxu1 %v1218_v21 }
  0x4a   :  { %554 = vmatpush.msra.mxu0 %v1089_v60  ;;  %706 = vmatpush.msra.mxu3 %v997_v13  ;;  %v1478_v60 = vand.u32 4294901760, %v1127_v24 }
  0x4b   :  { %643 = vmatpush.msra.mxu2 %v1473_v1  ;;  %395 = vmatpush.msrb.mxu1 %v1010_v32  ;;  %v1480_v32 = vand.u32 4294901760, %v1149_v49 }
  0x4c   :  { %557 = vmatpush.msra.mxu0 %v1109_v33  ;;  %708 = vmatpush.msra.mxu3 %v1012_v34 }
  0x4d   :  { %598 = vmatpush.msra.mxu1 %v997_v13  ;;  %647 = vmatpush.msra.mxu2 %v1474_v47  ;;  %v1477_v13 = vand.u32 4294901760, %v1109_v33  ;;  %v1479_v33 = vand.u32 4294901760, %v1133_v23 }
  0x4e   :  { %438 = vmatmul.f32.vlgmr.msrb.gmra.mxu2 %v437_v57  ;;  %560 = vmatpush.msra.mxu0 %v1127_v24  ;;  %v1481_v24 = vand.u32 4294901760, %v1172_v15 }
  0x4f   :  { %600 = vmatpush.msra.mxu1 %v1012_v34  ;;  %651 = vmatpush.msra.mxu2 %v1475_v30 }
  0x50   :  { %710 = vmatpush.msra.mxu3 %v1476_v58  ;;  %360 = vmatmul.f32.vlgmr.msrb.gmra.mxu0 %v1218_v21 }
  0x51   :  { %539 = vmatmul.f32.vlgmr.msrb.gmra.mxu3 %v1293_v8  ;;  %563 = vmatpush.msra.mxu0 %v1133_v23  ;;  %v1482_v23 = vand.u32 4294901760, %v1187_v45 }
  0x52   :  { %602 = vmatpush.msra.mxu1 %v1476_v58  ;;  %655 = vmatpush.msra.mxu2 %v1477_v13 }
  0x53   :  { %712 = vmatpush.msra.mxu3 %v1059_v18  ;;  %397 = vmatmul.f32.vlgmr.msrb.gmra.mxu1 %v1218_v21 }
  0x54   :  { %566 = vmatpush.msra.mxu0 %v1149_v49  ;;  %604 = vmatpush.msra.mxu1 %v1059_v18 }
  0x55   :  { %659 = vmatpush.msra.mxu2 %v1478_v60  ;;  %714 = vmatpush.msra.mxu3 %v1075_v44 }
  0x56   :  { %569 = vmatpush.msra.mxu0 %v1172_v15  ;;  %606 = vmatpush.msra.mxu1 %v1075_v44  ;;  %v796_v44 = vmov 0.0  }
  0x57   :  { %663 = vmatpush.msra.mxu2 %v1479_v33  ;;  %716 = vmatpush.msra.mxu3 %v1091_v51  ;;  %13 = vst.msk [vmem:[#allocation2] sm:$0x3] %vm12_vm0, %v796_v44 }
  0x58   :  { %572 = vmatpush.msra.mxu0 %v1187_v45  ;;  %608 = vmatpush.msra.mxu1 %v1091_v51  ;;  %14 = vst.msk [vmem:[#allocation2 + $0x8] sm:$0x3] %vm12_vm0, %v796_v44 }
  0x59   :  { %667 = vmatpush.msra.mxu2 %v1480_v32  ;;  %718 = vmatpush.msra.mxu3 %v1101_v63  ;;  %15 = vst.msk [vmem:[#allocation2 + $0x6] sm:$0x3] %vm12_vm0, %v796_v44 }
  0x5a   :  { %575 = vmatpush.msra.mxu0 %v1200_v54  ;;  %610 = vmatpush.msra.mxu1 %v1101_v63  ;;  %16 = vst.msk [vmem:[#allocation2 + $0xe] sm:$0x3] %vm12_vm0, %v796_v44 }
  0x5b   :  { %671 = vmatpush.msra.mxu2 %v1481_v24  ;;  %720 = vmatpush.msra.mxu3 %v1116_v27 }
  0x5c   :  { %578 = vmatpush.msra.mxu0 %v1216_v2  ;;  %612 = vmatpush.msra.mxu1 %v1116_v27 }
  0x5d   :  { %675 = vmatpush.msra.mxu2 %v1482_v23  ;;  %722 = vmatpush.msra.mxu3 %v1143_v22 }
  0x5e   :  { %581 = vmatpush.msra.mxu0 %v1234_v29  ;;  %614 = vmatpush.msra.mxu1 %v1143_v22 }
  0x5f   :  { %679 = vmatpush.msra.mxu2 %v504_v26  ;;  %724 = vmatpush.msra.mxu3 %v1159_v62 }
  0x60   :  { %584 = vmatpush.msra.mxu0 %v1261_v5  ;;  %616 = vmatpush.msra.mxu1 %v1159_v62 }
  0x61   :  { %683 = vmatpush.msra.mxu2 %v510_v4  ;;  %726 = vmatpush.msra.mxu3 %v1174_v16 }
  0x62   :  { %587 = vmatpush.msra.mxu0 %v1274_v39  ;;  %618 = vmatpush.msra.mxu1 %v1174_v16 }
  0x63   :  { %687 = vmatpush.msra.mxu2 %v516_v0  ;;  %728 = vmatpush.msra.mxu3 %v1189_v19 }
  0x64   :  { %590 = vmatpush.msra.mxu0 %v1288_v53  ;;  %620 = vmatpush.msra.mxu1 %v1189_v19 }
  0x65   :  { %691 = vmatpush.msra.mxu2 %v522_v36  ;;  %730 = vmatpush.msra.mxu3 %v1202_v56 }
  0x66   :  { %593 = vmatmul.f32.vlgmr.msra.gmra.mxu0 %v1311_v20  ;;  %622 = vmatpush.msra.mxu1 %v1202_v56 }
  0x67   :  { %695 = vmatpush.msra.mxu2 %v528_v12  ;;  %732 = vmatpush.msra.mxu3 %v1231_v7 }
  0x68   :  { %624 = vmatpush.msra.mxu1 %v1231_v7 }
  0x69   :  { %699 = vmatpush.msra.mxu2 %v534_v10  ;;  %734 = vmatpush.msra.mxu3 %v1247_v37 }
  0x6a   :  { %701 = vmatmul.f32.vlgmr.msra.gmra.mxu2 %v1293_v8  ;;  %626 = vmatpush.msra.mxu1 %v1247_v37 }
  0x6b   :  { %736 = vmatpush.msra.mxu3 %v1266_v46 }
  0x6c   :  { %738 = vmatmul.f32.vlgmr.msra.gmra.mxu3 %v1293_v8  ;;  %628 = vmatpush.msra.mxu1 %v1266_v46 }
  0x6d   :  { %632 = vmatmul.f32.vlgmr.msra.gmra.mxu1 %v435_v11 }
  0xbc   :  { %v98_v51 = vpop.f32.mrf.mxu0 }
  0xc6   :  { %v199_v27 = vpop.f32.mrf.mxu1 }
  0xc7   :  { %v200_v34 = vadd.f32 %v199_v27, %v98_v51 }
  0xc8   :  { %v253_v42 = vpop.f32.mrf.mxu2  ;;  %v292_v18 = vpop.f32.mrf.mxu3 }
  0xc9   :  { %v254_v56 = vadd.f32 %v253_v42, %v200_v34 }
  0xcb   :  { %v293_v49 = vadd.f32 %v292_v18, %v254_v56 }
  0xcd   :  { %v361_v63 = vpop.f32.mrf.mxu0 }
  0xce   :  { %v362_v22 = vadd.f32 %v361_v63, %v293_v49 }
  0xd0   :  { %v398_v15 = vpop.f32.mrf.mxu1 }
  0xd1   :  { %v399_v62 = vadd.f32 %v398_v15, %v362_v22  ;;  %v439_v45 = vpop.f32.mrf.mxu2 }
  0xd3   :  { %v440_v16 = vadd.f32 %v439_v45, %v399_v62 }
  0xd4   :  { %v540_v19 = vpop.f32.mrf.mxu3 }
  0xd5   :  { %v541_v54 = vadd.f32 %v540_v19, %v440_v16 }
  0xe3   :  { %v594_v14 = vpop.f32.mrf.mxu0 }
  0xe4   :  { %v595_v2 = vadd.f32 %v594_v14, %v541_v54 }
  0xea   :  { %v633_v21 = vpop.f32.mrf.mxu1 }
  0xeb   :  { %v634_v26 = vadd.f32 %v633_v21, %v595_v2 }
  0xed   :  { %v702_v7 = vpop.f32.mrf.mxu2 }
  0xee   :  { %v703_v29 = vadd.f32 %v702_v7, %v634_v26 }
  0xef   :  { %v739_v4 = vpop.f32.mrf.mxu3 }
  0xf0   :  { %v740_v37 = vadd.f32 %v739_v4, %v703_v29 }
  0xf2   :  { %v743_v0 = vrot.slane %v740_v37, 4  ;;  %746 = vst.msk [vmem:[#allocation2 + $0x2] sm:$0xf] %vm745_vm1, %v740_v37 }
  0xf4   :  { %747 = vst.msk [vmem:[#allocation2 + $0xa] sm:$0xf] %vm745_vm1, %v743_v0 }
  0xf5   :  { %760 = dma.vmem_to_hbm [thread:$0]  %s753_s19, 256, %s755_s22, [#allocation3], %s798_s23, %s798_s23, %s799_s24  }
  0xf6   :  { %794 = dma.done.wait [#allocation3], 256  }
  0xf7   :  { %795 = vsyncadd [#allocation3], 4294967040 }
  0xf8   :  { %765 = vsyncpa [#allocation3], 1 }

</bundles_post_ra>
